<compile_context>
chip_gen: v7x
topology: tpu7x:2x2x1
jax: 0.10.0
libtpu: 0.0.40
codegen_flags: <defaults>
</compile_context>

<pallas_src>
import numpy as np
import jax
import jax.numpy as jnp
from jax.experimental import pallas as pl
from jax.experimental.pallas import tpu as pltpu

# ---- hyperparameters (mirror LiquidStateMachine.__init__ args) ---------------
N_INP = 16
NE, NI = 100, 28
N_HID = NE + NI              # 128 -> lane-dense outputs
N_TOT = N_HID + N_INP        # 144 total contraction work per row
DT = 0.01
RC = 5.0
BIAS = 0.1
THRESHOLD = 1.0
RESET = 0.0
RHO = 0.9
WIN_E, WIN_I = 1.0, 1.0
W_E, W_I = 0.5, 0.5
B = 8                        # f32 sublane minimum for the toy forward test

SCALE = RC * DT              # Euler step scale, folded into the weights
LEAK = 1.0 - SCALE           # coefficient of hy_r after folding
BIAS_S = BIAS * SCALE        # pre-scaled bias

# Batch tiling policy:
#   <= 512 rows  : single whole-block call (everything resident in VMEM).
#   >  512 rows  : 'parallel' grid, 512-row tiles (>=2 steps -> both v7x TCs),
#                  VMEM per tile ~< 1.5 MiB << 32 MiB scoped default on v7x.
_DEFAULT_TILE = 512
_WHOLE_BLOCK_MAX_ROWS = 512


def _full_vmem():
    # Whole-array block resident in VMEM (no grid, no pipeline bookkeeping).
    return pl.BlockSpec(memory_space=pltpu.MemorySpace.VMEM)


def _pick_batch_tile(b, batch_tile):
    """Return a row-tile size, or None for the grid-less whole-block path."""
    if batch_tile is not None:
        return None if batch_tile >= b else batch_tile
    if b <= _WHOLE_BLOCK_MAX_ROWS:
        return None
    t = min(_DEFAULT_TILE, b // 2)
    t -= t % 8
    while t >= 8:
        if b % t == 0:
            return t
        t -= 8
    return None                                    # no clean divisor: whole block


# ---- kernel 1: specialized first step (u0 = hy0 = 0) --------------------------
def lif_first_step_kernel(x_ref, x2h_ref, u_out_ref, spk_ref):
    # u0 = hy0 = 0  =>  spike == 0, reset is a no-op, u0 @ h2h == 0.
    # Only x @ x2h survives: u1 = (x @ x2h + bias)*rc*dt = x @ x2h_s + BIAS_S.
    u_out_ref[...] = (jnp.dot(x_ref[...].astype(jnp.bfloat16), x2h_ref[...],
                              preferred_element_type=jnp.float32) + BIAS_S)
    # First-step spike is identically zero; emit it here so the whole T=1
    # forward is one kernel (no extra XLA fill launch).
    spk_ref[...] = jnp.zeros_like(spk_ref)


def lif_first_step(x, x2h_s, *, batch_tile=None):
    b, n_inp = x.shape
    n_hid = x2h_s.shape[1]
    out_shape = (jax.ShapeDtypeStruct((b, n_hid), jnp.float32),
                 jax.ShapeDtypeStruct((b, n_hid), jnp.float32))
    cost = pl.CostEstimate(
        flops=2 * b * n_inp * n_hid,
        transcendentals=0,
        bytes_accessed=b * n_inp * 4 + n_inp * n_hid * 2 + 2 * b * n_hid * 4)
    tile = _pick_batch_tile(b, batch_tile)
    if tile is None:
        return pl.pallas_call(
            lif_first_step_kernel,
            out_shape=out_shape,
            in_specs=[_full_vmem(), _full_vmem()],
            out_specs=(_full_vmem(), _full_vmem()),
            cost_estimate=cost,
        )(x, x2h_s)
    return pl.pallas_call(
        lif_first_step_kernel,
        out_shape=out_shape,
        grid=(b // tile,),
        in_specs=[pl.BlockSpec((tile, n_inp), lambda i: (i, 0)),
                  pl.BlockSpec((n_inp, n_hid), lambda i: (0, 0))],
        out_specs=(pl.BlockSpec((tile, n_hid), lambda i: (i, 0)),
                   pl.BlockSpec((tile, n_hid), lambda i: (i, 0))),
        compiler_params=pltpu.CompilerParams(
            dimension_semantics=("parallel",)),
        cost_estimate=cost,
    )(x, x2h_s)


# ---- kernel 2: general LIF cell (recurrent-capable) ----------------------------
def lif_cell_kernel(x_ref, u_ref, hy_ref, h2h_ref, x2h_ref, u_out_ref, spk_ref):
    # Argument roles match the swapped torch call LIFcell(x_t, u, hy):
    #   caller's hy is thresholded/reset, caller's u feeds the h2h recurrence.
    hy = hy_ref[...]
    fired = hy > THRESHOLD
    spk_ref[...] = fired.astype(spk_ref.dtype)         # (hy > thr) * 1.0
    hy_r = jnp.where(fired, RESET, hy)                 # hy[spike == 1] = reset

    # Two bf16 MXU dots summed in f32.  Keeping the weights split avoids the
    # f32 [u|x] scratch round-trip and its lane-masked partial store (vst was
    # the binding slot, worst on v5e); K=144 costs the same MXU passes anyway.
    pre = jnp.dot(u_ref[...].astype(jnp.bfloat16), h2h_ref[...],
                  preferred_element_type=jnp.float32)
    pre = pre + jnp.dot(x_ref[...].astype(jnp.bfloat16), x2h_ref[...],
                        preferred_element_type=jnp.float32)

    # u_new = hy_r + (-hy_r + u@h2h + x@x2h + bias)*rc*dt, rc*dt folded in:
    #       = hy_r*(1 - rc*dt) + pre + bias*rc*dt.
    u_out_ref[...] = hy_r * LEAK + pre + BIAS_S
    # Note: spikes could be emitted as bf16/int8 (exactly 0/1) to halve output
    # HBM traffic on the mem-bound path if downstream tolerates it.


def lif_cell(x, u, hy, h2h_s, x2h_s, *, batch_tile=None):
    """One LIFcell step; returns (u_new, spike), both (B, n_hid) float32.

    `u` feeds the h2h recurrence, `hy` is the state that is thresholded/reset
    (matching the swapped argument roles inside the torch LIFcell).  The
    in-place reset of the caller's hy is immaterial (torch overwrites hy with
    leaky(u)[0] right after); reconstruct hy_r = where(spike==1, reset, hy) if
    ever needed.
    """
    b, n_hid = u.shape
    n_inp = x.shape[1]
    out_shape = (jax.ShapeDtypeStruct((b, n_hid), jnp.float32),
                 jax.ShapeDtypeStruct((b, n_hid), jnp.float32))
    cost = pl.CostEstimate(
        flops=2 * b * (n_hid + n_inp) * n_hid,
        transcendentals=0,
        bytes_accessed=(b * (n_inp + 2 * n_hid) * 4
                        + (n_hid * n_hid + n_inp * n_hid) * 2
                        + 2 * b * n_hid * 4))
    tile = _pick_batch_tile(b, batch_tile)
    if tile is None:
        # Small batch: single whole-array block, no grid / pipelining overhead.
        return pl.pallas_call(
            lif_cell_kernel,
            out_shape=out_shape,
            in_specs=[_full_vmem()] * 5,
            out_specs=(_full_vmem(), _full_vmem()),
            cost_estimate=cost,
        )(x, u, hy, h2h_s, x2h_s)
    # Large batch: batch-tiled 'parallel' grid (both TensorCores on v7x); the
    # weight block indices are constant, so the weights stay VMEM-resident.
    assert b % tile == 0 and tile % 8 == 0
    return pl.pallas_call(
        lif_cell_kernel,
        out_shape=out_shape,
        grid=(b // tile,),
        in_specs=[pl.BlockSpec((tile, n_inp), lambda i: (i, 0)),
                  pl.BlockSpec((tile, n_hid), lambda i: (i, 0)),
                  pl.BlockSpec((tile, n_hid), lambda i: (i, 0)),
                  pl.BlockSpec((n_hid, n_hid), lambda i: (0, 0)),
                  pl.BlockSpec((n_inp, n_hid), lambda i: (0, 0))],
        out_specs=(pl.BlockSpec((tile, n_hid), lambda i: (i, 0)),
                   pl.BlockSpec((tile, n_hid), lambda i: (i, 0))),
        # Working set is tiny; if n_hid / tile are ever scaled up, set
        # vmem_limit_bytes explicitly and re-derive the tile against v7x's
        # 64 MiB physical / 32 MiB scoped VMEM (half of v5e/v6e).
        compiler_params=pltpu.CompilerParams(
            dimension_semantics=("parallel",)),
        cost_estimate=cost,
    )(x, u, hy, h2h_s, x2h_s)


# ---- forward -------------------------------------------------------------------
def lsm_forward(x, params):
    """Equivalent of LiquidStateMachine.forward: returns (u_list, spike_list)."""
    # x.unsqueeze(1) => exactly one timestep with zero initial state, so only
    # the specialized first-step kernel runs (the h2h matmul is provably zero
    # and the spike is identically zero; both outputs come from one kernel).
    u1, spk0 = lif_first_step(x, params["x2h_s"])
    # TODO(synk): hy = self.leaky(u)[0] (snntorch Leaky) is dead code for this
    # single-timestep forward (hy is neither returned nor reused) and is not
    # reproduced.  For a real T>1 recurrence, add a trailing 'arbitrary' time
    # grid axis (or in-kernel fori_loop) with the weights and u/hy state held
    # in VMEM scratch across steps instead of calling lif_cell per step.
    return [u1], [spk0]


# ---- deterministic parameter construction (mirrors __init__ shapes) ------------
def build_params(key):
    """gamma/epsilon vectors and snn.Leaky are unused in forward() -> skipped."""
    k1, k2 = jax.random.split(key)
    # h2h: excitatory (+w_e) first Ne columns, inhibitory (-w_i) last Ni columns
    h2h = np.asarray(jax.random.uniform(k1, (N_HID, N_HID), jnp.float32))
    h2h = np.concatenate((W_E * h2h[:, :NE], -W_I * h2h[:, NE:]), axis=1)
    # spectral_norm_scaling(h2h, rho): rescale so the spectral radius == rho
    radius = np.max(np.abs(np.linalg.eigvals(h2h)))
    h2h = h2h * (RHO / radius)
    # x2h: rand(n_inp, n_hid) * column-wise input scaling
    input_scaling = np.concatenate((WIN_E * np.ones(NE), WIN_I * np.ones(NI)))
    x2h = np.asarray(jax.random.uniform(k2, (N_INP, N_HID), jnp.float32)) * input_scaling
    # Fold rc*dt into the static weights once at init (free).  bf16 copies are
    # the MXU operands; f32 copies are kept for the accuracy cross-check.
    h2h_s_f32 = jnp.asarray(h2h * SCALE, jnp.float32)
    x2h_s_f32 = jnp.asarray(x2h * SCALE, jnp.float32)
    return {"h2h_s": h2h_s_f32.astype(jnp.bfloat16),
            "x2h_s": x2h_s_f32.astype(jnp.bfloat16),
            "h2h_s_f32": h2h_s_f32,
            "x2h_s_f32": x2h_s_f32}


# ---- pure-JAX references --------------------------------------------------------
def lif_cell_ref(x, u, hy, h2h_s, x2h_s):
    fired = hy > THRESHOLD
    spike = fired.astype(jnp.float32)
    hy_r = jnp.where(fired, RESET, hy)
    cast = h2h_s.dtype
    pre = (jnp.dot(u.astype(cast), h2h_s, preferred_element_type=jnp.float32)
           + jnp.dot(x.astype(cast), x2h_s, preferred_element_type=jnp.float32))
    return hy_r * LEAK + pre + BIAS_S, spike


def lsm_forward_ref(x, x2h_s):
    u1 = (jnp.dot(x.astype(x2h_s.dtype), x2h_s,
                  preferred_element_type=jnp.float32) + BIAS_S)
    return [u1], [jnp.zeros((x.shape[0], x2h_s.shape[1]), jnp.float32)]


if __name__ == "__main__":
    key = jax.random.PRNGKey(0)
    kp, kx, ku, kh, kxb, kub, khb = jax.random.split(key, 7)
    params = build_params(kp)

    # 1) forward() path (T = 1, zero initial state) -> specialized fused kernel
    x = jax.random.normal(kx, (B, N_INP), jnp.float32)
    u_list, spike_list = lsm_forward(x, params)
    u1 = jax.block_until_ready(u_list[0])
    spk0 = np.asarray(spike_list[0])
    u1_bf, s_bf = lsm_forward_ref(x, params["x2h_s"])
    np.testing.assert_allclose(np.asarray(u1), np.asarray(u1_bf[0]),
                               rtol=1e-4, atol=1e-4)
    np.testing.assert_array_equal(spk0, np.asarray(s_bf[0]))
    # Accuracy vs the f32 (torch-equivalent) weights: bf16 quantization of the
    # static weights is a deliberate trade-off, bounded here.
    u1_f32, _ = lsm_forward_ref(x, params["x2h_s_f32"])
    np.testing.assert_allclose(np.asarray(u1), np.asarray(u1_f32[0]),
                               rtol=2e-2, atol=2e-3)

    # 2) general recurrent cell with non-zero state (grid-less whole-block path)
    u0 = jax.random.normal(ku, (B, N_HID), jnp.float32)
    hy0 = jax.random.uniform(kh, (B, N_HID), jnp.float32, minval=0.0, maxval=2.0)
    u_k, s_k = lif_cell(x, u0, hy0, params["h2h_s"], params["x2h_s"])
    jax.block_until_ready(u_k)
    u_r, s_r = lif_cell_ref(x, u0, hy0, params["h2h_s"], params["x2h_s"])
    np.testing.assert_allclose(np.asarray(u_k), np.asarray(u_r),
                               rtol=1e-4, atol=1e-4)
    np.testing.assert_array_equal(np.asarray(s_k), np.asarray(s_r))
    u_r32, s_r32 = lif_cell_ref(x, u0, hy0,
                                params["h2h_s_f32"], params["x2h_s_f32"])
    np.testing.assert_allclose(np.asarray(u_k), np.asarray(u_r32),
                               rtol=2e-2, atol=2e-3)
    np.testing.assert_array_equal(np.asarray(s_k), np.asarray(s_r32))

    # 3) large batch: auto-picked 512-row 'parallel' grid (2 steps -> v7x megacore)
    BB = 1024
    xb = jax.random.normal(kxb, (BB, N_INP), jnp.float32)
    ub = jax.random.normal(kub, (BB, N_HID), jnp.float32)
    hyb = jax.random.uniform(khb, (BB, N_HID), jnp.float32, minval=0.0, maxval=2.0)
    u_kb, s_kb = lif_cell(xb, ub, hyb, params["h2h_s"], params["x2h_s"])
    jax.block_until_ready(u_kb)
    u_rb, s_rb = lif_cell_ref(xb, ub, hyb, params["h2h_s"], params["x2h_s"])
    np.testing.assert_allclose(np.asarray(u_kb), np.asarray(u_rb),
                               rtol=1e-4, atol=1e-4)
    np.testing.assert_array_equal(np.asarray(s_kb), np.asarray(s_rb))

    print("KERNEL_OK")
</pallas_src>

<mosaic_0001>
module attributes {stable_mosaic.version = 11 : i64} {
  func.func @lif_first_step_kernel(%arg0: memref<8x16xf32, #tpu.memory_space<vmem>>, %arg1: memref<16x128xbf16, #tpu.memory_space<vmem>>, %arg2: memref<8x128xf32, #tpu.memory_space<vmem>>, %arg3: memref<8x128xf32, #tpu.memory_space<vmem>>) attributes {dimension_semantics = [], scalar_prefetch = 0 : i64, scratch_operands = 0 : i64, tpu.core_type = #tpu.core_type<tc>} {
    %c0 = arith.constant 0 : index
    %c0_0 = arith.constant 0 : index
    %0 = vector.load %arg0[%c0, %c0_0] : memref<8x16xf32, #tpu.memory_space<vmem>>, vector<8x16xf32>
    %1 = arith.truncf %0 : vector<8x16xf32> to vector<8x16xbf16>
    %c0_1 = arith.constant 0 : index
    %c0_2 = arith.constant 0 : index
    %2 = vector.load %arg1[%c0_1, %c0_2] : memref<16x128xbf16, #tpu.memory_space<vmem>>, vector<16x128xbf16>
    %cst = arith.constant dense<0.000000e+00> : vector<8x128xf32>
    %3 = tpu.matmul %1, %2, %cst {dimension_numbers = #tpu.dot_dimension_numbers<[1], [0], [0], [1], [0, 0, 1, 1], [], []>} : vector<8x16xbf16>, vector<16x128xbf16>, vector<8x128xf32> -> vector<8x128xf32>
    %cst_3 = arith.constant 5.000000e-03 : f32
    %4 = vector.broadcast %cst_3 : f32 to vector<8x128xf32>
    %5 = arith.addf %3, %4 : vector<8x128xf32>
    %c0_4 = arith.constant 0 : index
    %c0_5 = arith.constant 0 : index
    %6 = vector.load %arg2[%c0_4, %c0_5] : memref<8x128xf32, #tpu.memory_space<vmem>>, vector<8x128xf32>
    tpu.vector_store %arg2[%c0_4, %c0_5], %5 {strides = array<i32>} : memref<8x128xf32, #tpu.memory_space<vmem>>, vector<8x128xf32>,
    %cst_6 = arith.constant 0.000000e+00 : f32
    %7 = vector.broadcast %cst_6 : f32 to vector<8x128xf32>
    %c0_7 = arith.constant 0 : index
    %c0_8 = arith.constant 0 : index
    %8 = vector.load %arg3[%c0_7, %c0_8] : memref<8x128xf32, #tpu.memory_space<vmem>>, vector<8x128xf32>
    tpu.vector_store %arg3[%c0_7, %c0_8], %7 {strides = array<i32>} : memref<8x128xf32, #tpu.memory_space<vmem>>, vector<8x128xf32>,
    return
  }
}

</mosaic_0001>

<bundles_post_ra>
// kernel: tpu_custom_call.1
= control target key start
LH: loop header
LB: loop body
LE: loop exit
PB: predicated region body
PF: predicated region fallthrough
CT: control target
= control target key end

     0   :  { %9 = vsyncpa [#allocation3], 0  ;;  %s326_s0 = inlined_call_operand.hbm [shape: f32[8,16], index: 0, kind: input, shape index: {}]   ;;  %s327_s1 = inlined_call_operand.hbm [shape: bf16[16,128], index: 1, kind: input, shape index: {}]   ;;  %s328_s2 = inlined_call_operand.hbm [shape: f32[8,128], index: 2, kind: output, shape index: {0}]   ;;  %s329_s3 = inlined_call_operand.hbm [shape: f32[8,128], index: 3, kind: output, shape index: {1}]  }
   0x1   :  { %10 = vsyncpa [#allocation6], 0 }
   0x2   :  { %11 = vsyncpa [#allocation4], 0 }
   0x3   :  { %12 = vsyncpa [#allocation9], 0  ;;  %s243_s12 = smov [#allocation2]   ;;  %s244_s14 = smov [#allocation5]  }
   0x4   :  { %s19_s13 = sshll.u32 %s243_s12, 4  ;;  %s28_s15 = sshll.u32 %s244_s14, 4  ;;  %s20_s13 = int_to_ptr.vmem [resolvable:$true] %s19_s13  ;;  %s271_s15 = int_to_ptr.vmem [resolvable:$true] %s28_s15 }
   0x5   :  { %s147_s18 = scalar_lea.hbm %s326_s0, 128 }
   0x6   :  { %p148_p0 = scmp.ne.s32.totalorder %s326_s0, %s147_s18  ;;  %p151_p1 = scmp.lt.u32.totalorder %s147_s18, %s326_s0 }
   0x8   :  { %p153_p2 = pnand %p151_p1, %p148_p0 }
   0xa   :  { %156 = shalt.err (!%p153_p2)
}
   0xb   :  { %s157_s23 = scalar_lea.vmem %s20_s13, 128  ;;  %p162_p4 = scmp.lt.s32.totalorder %s20_s13, %s20_s13 }
   0xc   :  { %p158_p3 = scmp.ne.s32.totalorder %s20_s13, %s157_s23  ;;  %p163_p5 = scmp.lt.s32.totalorder %s157_s23, %s157_s23 }
   0xe   :  { %p164_p6 = por %p163_p5, %p162_p4 }
  0x10   :  { %p165_p7 = pnand %p164_p6, %p158_p3 }
  0x12   :  { %168 = shalt.err (!%p165_p7)
}
  0x13   :  { %22 = dma.hbm_to_vmem [thread:$0]  %s326_s0, 128, %s20_s13, [#allocation3]  }
  0x14   :  { %s169_s28 = scalar_lea.hbm %s327_s1, 128 }
  0x15   :  { %p170_p8 = scmp.ne.s32.totalorder %s327_s1, %s169_s28  ;;  %p173_p9 = scmp.lt.u32.totalorder %s169_s28, %s327_s1 }
  0x17   :  { %p175_p10 = pnand %p173_p9, %p170_p8 }
  0x19   :  { %178 = shalt.err (!%p175_p10)
}
  0x1a   :  { %s179_s6 = scalar_lea.vmem %s271_s15, 128  ;;  %p184_p12 = scmp.lt.s32.totalorder %s271_s15, %s271_s15 }
  0x1b   :  { %p180_p11 = scmp.ne.s32.totalorder %s271_s15, %s179_s6  ;;  %p185_p13 = scmp.lt.s32.totalorder %s179_s6, %s179_s6 }
  0x1d   :  { %p186_p0 = por %p185_p13, %p184_p12 }
  0x1f   :  { %p187_p1 = pnand %p186_p0, %p180_p11 }
  0x21   :  { %190 = shalt.err (!%p187_p1)
}
  0x22   :  { %s245_s0 = smov 64   ;;  %s246_s7 = smov 4  }
  0x23   :  { %34 = dma.hbm_to_vmem [thread:$0]  %s327_s1, 128, %s271_s15, [#allocation6], %s245_s0, %s245_s0, %s246_s7  }
  0x24   :  { %235 = dma.done.wait [#allocation3], 128  }
  0x25   :  { %236 = vsyncadd [#allocation3], 4294967168 }
  0x26   :  { %237 = dma.done.wait [#allocation6], 128  }
  0x27   :  { %238 = vsyncadd [#allocation6], 4294967168  ;;  %v247_v0 = vmov 0.0   ;;  %vm248_vm0 = vmmov 0   ;;  %v146_v1 = vld [vmem:[#allocation5] sm:$0xff]   ;;  %v42_v2 = vld [vmem:[#allocation2] sm:$0xff] }
  0x28   :  { %132 = vmatprep.subr.bf16.mxu0 %v247_v0  ;;  %97 = vst [vmem:[#allocation8] sm:$0xff] %v247_v0  ;;  %134 = vmatprep.mubr.msk.bf16.mxu0 %vm248_vm0, %v247_v0  ;;  %v43_v3 = vpack.c.bf16 %v42_v2, %v42_v2  ;;  %vm52_vm1 = vcmask 130048   ;;  %s249_s10 = smov [#allocation8]  }
  0x29   :  { %133 = vmatpush3.bf16.msra.mxu0 %v146_v1  ;;  %s114_s11 = sshll.u32 %s249_s10, 4  ;;  %s115_s11 = int_to_ptr.vmem [resolvable:$true] %s114_s11 }
  0x2a   :  { %s191_s12 = scalar_lea.vmem %s115_s11, 128  ;;  %p196_p3 = scmp.lt.s32.totalorder %s115_s11, %s115_s11 }
  0x2b   :  { %p192_p2 = scmp.ne.s32.totalorder %s115_s11, %s191_s12  ;;  %p197_p4 = scmp.lt.s32.totalorder %s191_s12, %s191_s12 }
  0x2c   :  { %135 = vmatmul.mubr.msk.bf16.vlgmr.msra.gmra.mrb[0].mxu0 %vm52_vm1, %v43_v3 }
  0x2d   :  { %p198_p5 = por %p197_p4, %p196_p3 }
  0x2f   :  { %p199_p6 = pnand %p198_p5, %p192_p2 }
  0x31   :  { %202 = shalt.err (!%p199_p6)
}
  0x32   :  { %s203_s14 = scalar_lea.hbm %s329_s3, 128 }
  0x33   :  { %p204_p7 = scmp.ne.s32.totalorder %s329_s3, %s203_s14  ;;  %p207_p8 = scmp.lt.u32.totalorder %s203_s14, %s329_s3 }
  0x35   :  { %p209_p9 = pnand %p207_p8, %p204_p7 }
  0x37   :  { %212 = shalt.err (!%p209_p9)
}
  0x38   :  { %117 = dma.vmem_to_hbm [thread:$0]  %s115_s11, 128, %s329_s3, [#allocation9]  }
  0x39   :  { %s250_s21 = smov [#allocation7]  }
  0x3a   :  { %s104_s22 = sshll.u32 %s250_s21, 4  ;;  %s105_s22 = int_to_ptr.vmem [resolvable:$true] %s104_s22 }
  0x3b   :  { %s213_s23 = scalar_lea.vmem %s105_s22, 128  ;;  %p218_p11 = scmp.lt.s32.totalorder %s105_s22, %s105_s22 }
  0x3c   :  { %p214_p10 = scmp.ne.s32.totalorder %s105_s22, %s213_s23  ;;  %p219_p12 = scmp.lt.s32.totalorder %s213_s23, %s213_s23 }
  0x3e   :  { %p220_p13 = por %p219_p12, %p218_p11 }
  0x40   :  { %p221_p0 = pnand %p220_p13, %p214_p10 }
  0xff   :  { %v90_v4 = vpop.f32.mrb[0].mxu0 }
 0x100   :  { %v91_v5 = vadd.f32 0.005, %v90_v4  ;;  %v136_v6 = vpop.f32.mrb[1].mxu0 }
 0x101   :  { %v93_v7 = vpop.f32.mrb[2].mxu0 }
 0x102   :  { %96 = vst [vmem:[#allocation7] sm:$0xff] %v91_v5  ;;  %v137_v8 = vpop.f32.mrb[3].mxu0 }
 0x103   :  { %224 = shalt.err (!%p221_p0)
}
 0x104   :  { %s225_s3 = scalar_lea.hbm %s328_s2, 128 }
 0x105   :  { %p226_p1 = scmp.ne.s32.totalorder %s328_s2, %s225_s3  ;;  %p229_p2 = scmp.lt.u32.totalorder %s225_s3, %s328_s2 }
 0x107   :  { %p231_p3 = pnand %p229_p2, %p226_p1 }
 0x109   :  { %234 = shalt.err (!%p231_p3)
}
 0x10a   :  { %107 = dma.vmem_to_hbm [thread:$0]  %s105_s22, 128, %s328_s2, [#allocation4]  }
 0x10b   :  { %239 = dma.done.wait [#allocation4], 128  }
 0x10c   :  { %240 = vsyncadd [#allocation4], 4294967168 }
 0x10d   :  { %241 = dma.done.wait [#allocation9], 128  }
 0x10e   :  { %242 = vsyncadd [#allocation9], 4294967168 }
 0x10f   :  { %124 = vsyncpa [#allocation3], 1 }
 0x110   :  { %125 = vsyncpa [#allocation6], 1 }
 0x111   :  { %126 = vsyncpa [#allocation4], 1 }
 0x112   :  { %127 = vsyncpa [#allocation9], 1 }

</bundles_post_ra>
